<compile_context>
chip_gen: v7x
topology: tpu7x:2x2x1
jax: 0.10.0
libtpu: 0.0.40
codegen_flags: <defaults>
</compile_context>

<pallas_src>
import numpy as np
import jax
import jax.numpy as jnp
from jax.experimental import pallas as pl
from jax.experimental.pallas import tpu as pltpu

OUT_DIM = 3        # xyz coordinates
OUT_PAD = 128      # lane-dense padded output width
HIGH = jax.lax.Precision.HIGHEST


# ---------------------------------------------------------------------------
# Pallas kernel: one grid step == TB batch elements.
# ---------------------------------------------------------------------------
def _recon_kernel(x_ref, cond_proj_ref, pool_w1_ref, w2_ref, b2_ref, out_ref):
    x = x_ref[...]                                            # (TB, N, D)
    tb, n, _ = x.shape

    # AdaptiveAvgPool2d((1, P)) row-mean (XLU); the column-bin averaging and
    # the pooled slice of Linear1 are pre-fused into pool_w1 (D, H).
    col_mean = jnp.mean(x, axis=1)                            # (TB, D)
    delta = jnp.dot(col_mean, pool_w1_ref[...],
                    preferred_element_type=jnp.float32)       # (TB, H)

    # Linear1 + ReLU:  h[b, n, :] = relu(cond_proj[n, :] + delta[b, :])
    h = jnp.maximum(cond_proj_ref[...][None, :, :] + delta[:, None, :], 0.0)

    # Output Linear (eval BatchNorm folded in, padded to 128 lanes).
    out = jnp.dot(h.reshape(tb * n, -1), w2_ref[...],
                  preferred_element_type=jnp.float32) + b2_ref[...]
    out_ref[...] = out.reshape(tb, n, -1)                     # (TB, N, 128)


# ---------------------------------------------------------------------------
# Wrapper
# ---------------------------------------------------------------------------
def protein_state_reconstructor_2d(x_flat, conditioner, params, *,
                                   num_nodes, tile_batch=4):
    """x_flat: (B*N, D) float32; conditioner: (N, C) float32.

    Returns X_pred: (B*N, 3) float32, matching the PyTorch module with
    pooling_type='blind', conditioner_mode='z_ref' (eval-mode BatchNorm).
    """
    BN, D = x_flat.shape
    N = num_nodes
    assert BN % N == 0, "Mismatch in x.shape vs. num_nodes & batch_size"
    B = BN // N
    H = params["w1c"].shape[-1]

    # -------- offline algebraic folding (batch-invariant, runs once in XLA) --
    # Conditioner half of Linear1 + bias (identical for every batch element).
    cond_proj = (jnp.dot(conditioner, params["w1c"], precision=HIGH)
                 + params["b1"])                              # (N, H)
    # Pool-bin matrix fused into the pooled half of Linear1.
    pool_w1 = jnp.dot(params["pool_m"], params["w1p"], precision=HIGH)  # (D, H)
    # Eval-mode BatchNorm folded into the output Linear.
    w2f = params["bn_scale"].reshape(H, 1) * params["w2"]               # (H, 3)
    b2f = jnp.dot(params["bn_shift"], params["w2"], precision=HIGH) + params["b2"]
    # Lane-dense output: pad 3 -> 128 output columns.
    w2p = jnp.zeros((H, OUT_PAD), jnp.float32).at[:, :OUT_DIM].set(w2f)
    b2p = jnp.zeros((1, OUT_PAD), jnp.float32).at[:, :OUT_DIM].set(b2f)

    # -------- batch tiling ---------------------------------------------------
    TB = max(1, min(tile_batch, B))
    n_steps = pl.cdiv(B, TB)
    B_pad = n_steps * TB
    x = x_flat.reshape(B, N, D)
    if B_pad != B:
        x = jnp.pad(x, ((0, B_pad - B), (0, 0), (0, 0)))

    const2d = lambda shape: pl.BlockSpec(shape, lambda i: (0, 0))

    out = pl.pallas_call(
        _recon_kernel,
        out_shape=jax.ShapeDtypeStruct((B_pad, N, OUT_PAD), jnp.float32),
        grid_spec=pltpu.PrefetchScalarGridSpec(
            num_scalar_prefetch=0,
            grid=(n_steps,),
            in_specs=[
                pl.BlockSpec((TB, N, D), lambda i: (i, 0, 0)),   # x tile
                const2d((N, H)),                                 # cond_proj
                const2d((D, H)),                                 # pool_w1
                const2d((H, OUT_PAD)),                           # W2 (BN-folded, padded)
                const2d((1, OUT_PAD)),                           # b2 (BN-folded, padded)
            ],
            out_specs=pl.BlockSpec((TB, N, OUT_PAD), lambda i: (i, 0, 0)),
        ),
        compiler_params=pltpu.CompilerParams(
            dimension_semantics=("parallel",)),
    )(x, cond_proj, pool_w1, w2p, b2p)

    return out[:B, :, :OUT_DIM].reshape(B * N, OUT_DIM)


# ---------------------------------------------------------------------------
# Deterministic parameter construction (mirrors nn.Module __init__ shapes).
# ---------------------------------------------------------------------------
def make_params(key, input_dim, cond_dim, pooled_dim, hidden_dim=128, eps=1e-5):
    D, C, P, H = input_dim, cond_dim, pooled_dim, hidden_dim
    final_in_dim = P + C

    # Adaptive-avg-pool column-bin matrix (exactly reproduces AdaptiveAvgPool2d
    # bin boundaries; rows are averaged separately inside the kernel).
    pool_m = np.zeros((D, P), dtype=np.float32)
    for j in range(P):
        start = (j * D) // P
        end = -((-(j + 1) * D) // P)  # ceil((j+1)*D/P)
        pool_m[start:end, j] = 1.0 / float(end - start)

    k1, k2, k3, k4 = jax.random.split(key, 4)
    bound1 = 1.0 / np.sqrt(final_in_dim)
    w1 = jax.random.uniform(k1, (final_in_dim, H), jnp.float32, -bound1, bound1)
    b1 = jax.random.uniform(k2, (1, H), jnp.float32, -bound1, bound1)
    bound2 = 1.0 / np.sqrt(H)
    w2 = jax.random.uniform(k3, (H, OUT_DIM), jnp.float32, -bound2, bound2)
    b2 = jax.random.uniform(k4, (1, OUT_DIM), jnp.float32, -bound2, bound2)

    # BatchNorm1d eval mode with default init: running_mean=0, running_var=1,
    # gamma=1, beta=0  ->  scale = 1/sqrt(1+eps), shift = 0.
    bn_scale = jnp.full((1, H), 1.0 / np.sqrt(1.0 + eps), jnp.float32)
    bn_shift = jnp.zeros((1, H), jnp.float32)

    return {
        "pool_m": jnp.asarray(pool_m),
        "w1p": w1[:P, :],          # pooled-latent slice of W1
        "w1c": w1[P:, :],          # conditioner slice of W1
        "b1": b1,
        "bn_scale": bn_scale,
        "bn_shift": bn_shift,
        "w2": w2,
        "b2": b2,
    }


# ---------------------------------------------------------------------------
# Pure-JAX reference (mirrors the PyTorch forward) for validation.
# ---------------------------------------------------------------------------
def reference_forward(x_flat, conditioner, params, *, num_nodes):
    BN, D = x_flat.shape
    B = BN // num_nodes
    x = x_flat.reshape(B, num_nodes, D)
    pooled = jnp.dot(jnp.mean(x, axis=1), params["pool_m"],
                     precision=HIGH)                                # (B, P)
    pooled_exp = jnp.repeat(pooled[:, None, :], num_nodes, axis=1)  # (B, N, P)
    cond = jnp.broadcast_to(conditioner[None], (B,) + conditioner.shape)
    mlp_in = jnp.concatenate([pooled_exp, cond], axis=-1).reshape(BN, -1)
    w1 = jnp.concatenate([params["w1p"], params["w1c"]], axis=0)
    h = jnp.maximum(jnp.dot(mlp_in, w1, precision=HIGH) + params["b1"], 0.0)
    h = h * params["bn_scale"] + params["bn_shift"]
    return jnp.dot(h, params["w2"], precision=HIGH) + params["b2"]


if __name__ == "__main__":
    # Small shapes consistent with the module.
    batch_size = 8
    num_nodes = 16
    input_dim = 40            # latent dim per node
    output_size_per_segment = (1, 10)
    pooled_dim = output_size_per_segment[0] * output_size_per_segment[1]
    cond_dim = input_dim      # conditioner_mode == 'z_ref'

    key = jax.random.PRNGKey(0)
    kx, kc, kp = jax.random.split(key, 3)
    x_flat = jax.random.normal(kx, (batch_size * num_nodes, input_dim),
                               jnp.float32)
    conditioner = jax.random.normal(kc, (num_nodes, cond_dim), jnp.float32)
    params = make_params(kp, input_dim, cond_dim, pooled_dim)

    x_pred = protein_state_reconstructor_2d(
        x_flat, conditioner, params,
        num_nodes=num_nodes, tile_batch=4)        # grid = (2,) -> 2 TC-parallel steps
    x_pred = jax.block_until_ready(x_pred)

    ref = reference_forward(x_flat, conditioner, params, num_nodes=num_nodes)
    np.testing.assert_allclose(np.asarray(x_pred), np.asarray(ref),
                               rtol=1e-4, atol=1e-4)

    assert x_pred.shape == (batch_size * num_nodes, OUT_DIM)
    print("KERNEL_OK")
</pallas_src>

<mosaic_0001>
module attributes {stable_mosaic.version = 11 : i64} {
  func.func @_recon_kernel(%arg0: i32, %arg1: memref<4x16x40xf32, #tpu.memory_space<vmem>>, %arg2: memref<16x128xf32, #tpu.memory_space<vmem>>, %arg3: memref<40x128xf32, #tpu.memory_space<vmem>>, %arg4: memref<128x128xf32, #tpu.memory_space<vmem>>, %arg5: memref<1x128xf32, #tpu.memory_space<vmem>>, %arg6: memref<4x16x128xf32, #tpu.memory_space<vmem>>) attributes {dimension_semantics = [#tpu.dimension_semantics<parallel>], iteration_bounds = array<i64: 2>, scalar_prefetch = 0 : i64, scratch_operands = 0 : i64, tpu.core_type = #tpu.core_type<tc>, window_params = [{transform_indices = @transform_0, window_bounds = array<i64: 4, 16, 40>}, {pipeline_mode = #tpu.pipeline_mode<synchronous>, transform_indices = @transform_1, window_bounds = array<i64: 16, 128>}, {pipeline_mode = #tpu.pipeline_mode<synchronous>, transform_indices = @transform_2, window_bounds = array<i64: 40, 128>}, {pipeline_mode = #tpu.pipeline_mode<synchronous>, transform_indices = @transform_3, window_bounds = array<i64: 128, 128>}, {pipeline_mode = #tpu.pipeline_mode<synchronous>, transform_indices = @transform_4, window_bounds = array<i64: 1, 128>}, {transform_indices = @transform_5, window_bounds = array<i64: 4, 16, 128>}]} {
    %c0 = arith.constant 0 : index
    %c0_0 = arith.constant 0 : index
    %c0_1 = arith.constant 0 : index
    %0 = vector.load %arg1[%c0, %c0_0, %c0_1] : memref<4x16x40xf32, #tpu.memory_space<vmem>>, vector<4x16x40xf32>
    %cst = arith.constant dense<0.000000e+00> : vector<4x40xf32>
    %1 = vector.multi_reduction <add>, %0, %cst [1] : vector<4x16x40xf32> to vector<4x40xf32>
    %cst_2 = arith.constant 1.600000e+01 : f32
    %2 = vector.broadcast %cst_2 : f32 to vector<4x40xf32>
    %3 = arith.divf %1, %2 : vector<4x40xf32>
    %c0_3 = arith.constant 0 : index
    %c0_4 = arith.constant 0 : index
    %4 = vector.load %arg3[%c0_3, %c0_4] : memref<40x128xf32, #tpu.memory_space<vmem>>, vector<40x128xf32>
    %cst_5 = arith.constant dense<0.000000e+00> : vector<4x128xf32>
    %5 = tpu.matmul %3, %4, %cst_5 {dimension_numbers = #tpu.dot_dimension_numbers<[1], [0], [0], [1], [0, 0, 1, 1], [], []>} : vector<4x40xf32>, vector<40x128xf32>, vector<4x128xf32> -> vector<4x128xf32>
    %c0_6 = arith.constant 0 : index
    %c0_7 = arith.constant 0 : index
    %6 = vector.load %arg2[%c0_6, %c0_7] : memref<16x128xf32, #tpu.memory_space<vmem>>, vector<16x128xf32>
    %7 = vector.shape_cast %6 : vector<16x128xf32> to vector<1x16x128xf32>
    %8 = vector.shape_cast %5 : vector<4x128xf32> to vector<4x1x128xf32>
    %9 = vector.broadcast %7 : vector<1x16x128xf32> to vector<4x16x128xf32>
    %10 = vector.broadcast %8 : vector<4x1x128xf32> to vector<4x16x128xf32>
    %11 = arith.addf %9, %10 : vector<4x16x128xf32>
    %cst_8 = arith.constant 0.000000e+00 : f32
    %12 = vector.broadcast %cst_8 : f32 to vector<4x16x128xf32>
    %13 = arith.maximumf %11, %12 : vector<4x16x128xf32>
    %14 = vector.shape_cast %13 : vector<4x16x128xf32> to vector<64x128xf32>
    %c0_9 = arith.constant 0 : index
    %c0_10 = arith.constant 0 : index
    %15 = vector.load %arg4[%c0_9, %c0_10] : memref<128x128xf32, #tpu.memory_space<vmem>>, vector<128x128xf32>
    %cst_11 = arith.constant dense<0.000000e+00> : vector<64x128xf32>
    %16 = tpu.matmul %14, %15, %cst_11 {dimension_numbers = #tpu.dot_dimension_numbers<[1], [0], [0], [1], [0, 0, 1, 1], [], []>} : vector<64x128xf32>, vector<128x128xf32>, vector<64x128xf32> -> vector<64x128xf32>
    %c0_12 = arith.constant 0 : index
    %c0_13 = arith.constant 0 : index
    %17 = vector.load %arg5[%c0_12, %c0_13] : memref<1x128xf32, #tpu.memory_space<vmem>>, vector<1x128xf32>
    %18 = vector.broadcast %17 : vector<1x128xf32> to vector<64x128xf32>
    %19 = arith.addf %16, %18 : vector<64x128xf32>
    %20 = vector.shape_cast %19 : vector<64x128xf32> to vector<4x16x128xf32>
    %c0_14 = arith.constant 0 : index
    %c0_15 = arith.constant 0 : index
    %c0_16 = arith.constant 0 : index
    %21 = vector.load %arg6[%c0_14, %c0_15, %c0_16] : memref<4x16x128xf32, #tpu.memory_space<vmem>>, vector<4x16x128xf32>
    tpu.vector_store %arg6[%c0_14, %c0_15, %c0_16], %20 {strides = array<i32>} : memref<4x16x128xf32, #tpu.memory_space<vmem>>, vector<4x16x128xf32>,
    return
  }
  func.func @transform_0(%arg0: i32) -> (i32, i32, i32) {
    %c0_i32 = arith.constant 0 : i32
    %c0_i32_0 = arith.constant 0 : i32
    %c0_i32_1 = arith.constant 0 : i32
    return %arg0, %c0_i32, %c0_i32_0 : i32, i32, i32
  }
  func.func @transform_1(%arg0: i32) -> (i32, i32) {
    %c0_i32 = arith.constant 0 : i32
    %c0_i32_0 = arith.constant 0 : i32
    %c0_i32_1 = arith.constant 0 : i32
    return %c0_i32, %c0_i32_0 : i32, i32
  }
  func.func @transform_2(%arg0: i32) -> (i32, i32) {
    %c0_i32 = arith.constant 0 : i32
    %c0_i32_0 = arith.constant 0 : i32
    %c0_i32_1 = arith.constant 0 : i32
    return %c0_i32, %c0_i32_0 : i32, i32
  }
  func.func @transform_3(%arg0: i32) -> (i32, i32) {
    %c0_i32 = arith.constant 0 : i32
    %c0_i32_0 = arith.constant 0 : i32
    %c0_i32_1 = arith.constant 0 : i32
    return %c0_i32, %c0_i32_0 : i32, i32
  }
  func.func @transform_4(%arg0: i32) -> (i32, i32) {
    %c0_i32 = arith.constant 0 : i32
    %c0_i32_0 = arith.constant 0 : i32
    %c0_i32_1 = arith.constant 0 : i32
    return %c0_i32, %c0_i32_0 : i32, i32
  }
  func.func @transform_5(%arg0: i32) -> (i32, i32, i32) {
    %c0_i32 = arith.constant 0 : i32
    %c0_i32_0 = arith.constant 0 : i32
    %c0_i32_1 = arith.constant 0 : i32
    return %arg0, %c0_i32, %c0_i32_0 : i32, i32, i32
  }
}

</mosaic_0001>

<bundles_post_ra>
// kernel: tpu_custom_call.1
= control target key start
LH: loop header
LB: loop body
LE: loop exit
PB: predicated region body
PF: predicated region fallthrough
CT: control target
= control target key end

     0   :  { %10 = vsyncpa [#allocation3], 0  ;;  %s1511_s0 = inlined_call_operand.hbm [shape: f32[8,16,40], index: 0, kind: input, shape index: {}]   ;;  %s1512_s1 = inlined_call_operand.hbm [shape: f32[16,128], index: 1, kind: input, shape index: {}]   ;;  %s1513_s2 = inlined_call_operand.hbm [shape: f32[40,128], index: 2, kind: input, shape index: {}]   ;;  %s1514_s3 = inlined_call_operand.hbm [shape: f32[128,128], index: 3, kind: input, shape index: {}]   ;;  %s1515_s4 = inlined_call_operand.vmem [shape: f32[1,128], index: 4, kind: input, shape index: {}]   ;;  %s1516_s5 = inlined_call_operand.hbm [shape: f32[8,16,128], index: 5, kind: output, shape index: {}]  }
   0x1   :  { %12 = vsyncpa [#allocation3 + $0x1], 0 }
   0x2   :  { %13 = vsyncpa [#allocation6], 0 }
   0x3   :  { %14 = vsyncpa [#allocation9], 0 }
   0x4   :  { %15 = vsyncpa [#allocation4], 0 }
   0x5   :  { %17 = vsyncpa [#allocation4 + $0x1], 0  ;;  %s1214_s18 = smov 0   ;;  %s1216_s19 = smov 0  }
   0x6   :  { %s1218_s20 = smov 0   ;;  %s1220_s21 = smov 0  }
   0x7 LB: > { %s1235_s22 = sadd.s32 4294967295, %s1169_s21   ;;  %s743_s23 = sadd.s32 4294967294, %s1169_s21   ;;  %s1169_s21 = sphi %s1220_s21, %s1539_s21   ;;  %s1165_s20 = sphi %s1218_s20, %s1538_s20   ;;  %s1161_s19 = sphi %s1216_s19, %s1537_s19   ;;  %s1157_s18 = sphi %s1214_s18, %s1536_s18  }
   0x8   : > { %p43_p0 = scmp.ne.s32.totalorder %s1161_s19, %s1157_s18  ;;  %p1517_p1 = scmp.eq.s32.totalorder %s1235_s22, 0 }
   0x9   : > { %p157_p3 = scmp.eq.s32.totalorder %s743_s23, 1  ;;  %p744_p5 = scmp.ge.s32.totalorder %s1169_s21, 1 }
   0xa   : > { %p1244_p4 = por %p1517_p1, %p43_p0  ;;  %p164_p7 = scmp.lt.s32.totalorder %s1169_s21, 3 }
   0xb   : > { %p1249_p6 = por %p157_p3, %p43_p0  ;;  %s1171_s27 = smov [#allocation5]  }
   0xc   : > { %s1520_s24 = scalar_select %p1244_p4, 1, 0 }
   0xd   : > { %s1521_s25 = scalar_select %p1249_p6, 1, 0 }
   0xe   : > { %p1254_p8 = pnand %p744_p5, %p164_p7  ;;  %s176_s28 = sshll.u32 %s1171_s27, 4  ;;  %s1258_s28 = int_to_ptr.vmem [resolvable:$true] %s176_s28 }
   0xf   : > { %s1172_s30 = smov [#allocation7]   ;;  %s1173_s7 = smov [#allocation8]  }
  0x10   : > { %s1522_s26 = scalar_select %p1254_p8, 1, 0 }
  0x11   : > { %p912_p9 = pneg %p1254_p8  ;;  %s189_s6 = sshll.u32 %s1172_s30, 4  ;;  %s1269_s6 = int_to_ptr.vmem [resolvable:$true] %s189_s6 }
  0x12   : > { %s1271_s8 = sshll.u32 %s1173_s7, 4  ;;  %s981_s11 = scalar_lea.hbm %s1512_s1, 256  ;;  %s203_s8 = int_to_ptr.vmem [resolvable:$true] %s1271_s8 }
  0x13   : > { %p1265_p11 = pnand %p912_p9, %p1517_p1  ;;  %p982_p12 = scmp.ne.s32.totalorder %s1512_s1, %s981_s11 }
  0x14   : > { %p988_p5 = scmp.lt.u32.totalorder %s981_s11, %s1512_s1 }
  0x15   : > { %p1281_p13 = pneg %p1265_p11 }
  0x17   : > { %p984_p0 = pnand %p1281_p13, %p982_p12 }
  0x19   : > { %p985_p3 = pneg %p984_p0 }
  0x1b   : > { %p990_p7 = pnand %p988_p5, %p985_p3 }
  0x1d   : > { %993 = shalt.err (!%p990_p7)
}
  0x1e   : > { %s994_s17 = scalar_lea.vmem %s1258_s28, 256  ;;  %p1002_p2 = scmp.lt.s32.totalorder %s1258_s28, %s1258_s28 }
  0x1f   : > { %p995_p9 = scmp.ne.s32.totalorder %s1258_s28, %s994_s17  ;;  %p1003_p6 = scmp.lt.s32.totalorder %s994_s17, %s994_s17 }
  0x21   : > { %p997_p10 = pnand %p995_p9, %p1281_p13  ;;  %p1004_p12 = por %p1003_p6, %p1002_p2 }
  0x23   : > { %p998_p1 = pneg %p997_p10 }
  0x25   : > { %p1005_p0 = pnand %p1004_p12, %p998_p1 }
  0x27   : > { %1008 = shalt.err (!%p1005_p0)
}
  0x28   : > { %s1174_s23 = smov 128   ;;  %s1175_s27 = smov 8  }
  0x29   : > { %915 = dma.hbm_to_vmem [thread:$0]  (!%p1265_p11), %s1512_s1, 256, %s1258_s28, [#allocation6], %s1174_s23, %s1174_s23, %s1175_s27  }
  0x2a   : > { %s1009_s11 = scalar_lea.hbm %s1513_s2, 640 }
  0x2b   : > { %p1010_p1 = scmp.ne.s32.totalorder %s1513_s2, %s1009_s11  ;;  %p1016_p10 = scmp.lt.u32.totalorder %s1009_s11, %s1513_s2 }
  0x2d   : > { %p1012_p2 = pnand %p1010_p1, %p1281_p13 }
  0x2f   : > { %p1013_p6 = pneg %p1012_p2 }
  0x31   : > { %p1018_p3 = pnand %p1016_p10, %p1013_p6 }
  0x33   : > { %1021 = shalt.err (!%p1018_p3)
}
  0x34   : > { %s1022_s28 = scalar_lea.vmem %s1269_s6, 640  ;;  %p1030_p12 = scmp.lt.s32.totalorder %s1269_s6, %s1269_s6 }
  0x35   : > { %p1023_p5 = scmp.ne.s32.totalorder %s1269_s6, %s1022_s28  ;;  %p1031_p0 = scmp.lt.s32.totalorder %s1022_s28, %s1022_s28 }
  0x37   : > { %p1025_p7 = pnand %p1023_p5, %p1281_p13  ;;  %p1032_p1 = por %p1031_p0, %p1030_p12 }
  0x39   : > { %p1026_p9 = pneg %p1025_p7 }
  0x3b   : > { %p1033_p2 = pnand %p1032_p1, %p1026_p9 }
  0x3d   : > { %1036 = shalt.err (!%p1033_p2)
}
  0x3e   : > { %918 = dma.hbm_to_vmem [thread:$0]  (!%p1265_p11), %s1513_s2, 640, %s1269_s6, [#allocation6], %s1174_s23, %s1174_s23, %s1175_s27  }
  0x3f   : > { %s1037_s10 = scalar_lea.hbm %s1514_s3, 2048 }
  0x40   : > { %p1038_p6 = scmp.ne.s32.totalorder %s1514_s3, %s1037_s10  ;;  %p1044_p5 = scmp.lt.u32.totalorder %s1037_s10, %s1514_s3 }
  0x42   : > { %p1040_p10 = pnand %p1038_p6, %p1281_p13 }
  0x44   : > { %p1041_p3 = pneg %p1040_p10 }
  0x46   : > { %p1046_p7 = pnand %p1044_p5, %p1041_p3 }
  0x48   : > { %1049 = shalt.err (!%p1046_p7)
}
  0x49   : > { %s1050_s16 = scalar_lea.vmem %s203_s8, 2048  ;;  %p1058_p1 = scmp.lt.s32.totalorder %s203_s8, %s203_s8 }
  0x4a   : > { %p1051_p9 = scmp.ne.s32.totalorder %s203_s8, %s1050_s16  ;;  %p1059_p2 = scmp.lt.s32.totalorder %s1050_s16, %s1050_s16 }
  0x4c   : > { %p1053_p12 = pnand %p1051_p9, %p1281_p13  ;;  %p1060_p4 = por %p1059_p2, %p1058_p1 }
  0x4e   : > { %p1054_p0 = pneg %p1053_p12 }
  0x50   : > { %p1061_p8 = pnand %p1060_p4, %p1054_p0 }
  0x52   : > { %1064 = shalt.err (!%p1061_p8)
}
  0x53   : > { %921 = dma.hbm_to_vmem [thread:$0]  (!%p1265_p11), %s1514_s3, 2048, %s203_s8, [#allocation9], %s1174_s23, %s1174_s23, %s1175_s27  }
  0x54   : > { %s1354_s14 = sadd.s32 1, %s1169_s21   ;;  %s30_s17 = sadd.s32 1, %s1165_s20 }
  0x55   : > { %s27_s29 = ssub.s32 %s1169_s21, %s1354_s14  ;;  %p37_p8 = scmp.ne.s32.totalorder %s1165_s20, %s1161_s19 }
  0x56   : > { %p28_p4 = scmp.eq.s32.totalorder %s27_s29, 0  ;;  %p38_p13 = scmp.eq.s32.totalorder %s1169_s21, 0 }
  0x57   : > { %p933_p6 = scmp.lt.s32.totalorder %s1169_s21, 2  ;;  %p1525_p3 = scmp.eq.s32.totalorder %s1235_s22, 1 }
  0x58   : > { %s1364_s30 = scalar_select %p28_p4, %s1165_s20, %s30_s17  }
  0x59   : > { %p39_p10 = por %p38_p13, %p37_p8  ;;  %p1368_p5 = por %p1525_p3, %p37_p8 }
  0x5a   : > { %s219_s9 = sand.u32 1, %s1165_s20   ;;  %s768_s10 = sshll.u32 %s1169_s21, 10 }
  0x5b   : > { %s749_s8 = sshll.u32 %s219_s9, 6  ;;  %s1377_s13 = scalar_lea.hbm %s1511_s0, %s768_s10 }
  0x5c   : > { %s223_s15 = scalar_lea.vmem [#allocation2], %s749_s8  ;;  %p1379_p11 = pnand %p933_p6, %p39_p10 }
  0x5d   : > { %s231_s16 = sshll.u32 %s223_s15, 4  ;;  %s1385_s28 = scalar_lea.sflag [#allocation3], %s219_s9  ;;  %s1383_s16 = int_to_ptr.vmem [resolvable:$true] %s231_s16 }
  0x5e   : > { %s1065_s29 = scalar_lea.hbm %s1377_s13, 1024  ;;  %p1067_p9 = pneg %p1379_p11 }
  0x5f   : > { %p1066_p7 = scmp.ne.s32.totalorder %s1377_s13, %s1065_s29  ;;  %s1070_s8 = scalar_lea.hbm %s1511_s0, 2048 }
  0x60   : > { %p1071_p1 = scmp.lt.u32.totalorder %s1377_s13, %s1511_s0  ;;  %p1072_p2 = scmp.lt.u32.totalorder %s1070_s8, %s1065_s29 }
  0x61   : > { %p1068_p12 = pnand %p1067_p9, %p1066_p7  ;;  %p1074_p8 = scmp.lt.u32.totalorder %s1065_s29, %s1377_s13 }
  0x62   : > { %p1073_p4 = por %p1072_p2, %p1071_p1 }
  0x63   : > { %p1069_p0 = pneg %p1068_p12 }
  0x64   : > { %p1075_p13 = por %p1074_p8, %p1073_p4 }
  0x66   : > { %p1076_p6 = pnand %p1075_p13, %p1069_p0 }
  0x68   : > { %1079 = shalt.err (!%p1076_p6)
}
  0x69   : > { %s1080_s9 = scalar_lea.vmem %s1383_s16, 1024  ;;  %s1176_s15 = smov [#allocation2]  }
  0x6a   : > { %p1081_p10 = scmp.ne.s32.totalorder %s1383_s16, %s1080_s9  ;;  %s1085_s17 = sshll.u32 %s1176_s15, 4  ;;  %s1086_s17 = int_to_ptr.vmem [resolvable:$false] %s1085_s17 }
  0x6b   : > { %s1087_s10 = scalar_lea.vmem %s1086_s17, 2048  ;;  %p1088_p12 = scmp.lt.s32.totalorder %s1383_s16, %s1086_s17 }
  0x6c   : > { %p1083_p3 = pnand %p1081_p10, %p1067_p9  ;;  %p1089_p1 = scmp.lt.s32.totalorder %s1087_s10, %s1080_s9 }
  0x6e   : > { %p1084_p7 = pneg %p1083_p3  ;;  %p1090_p2 = por %p1089_p1, %p1088_p12 }
  0x70   : > { %p1091_p4 = pnand %p1090_p2, %p1084_p7 }
  0x72   : > { %1094 = shalt.err (!%p1091_p4)
}
  0x73   : > { %925 = dma.hbm_to_vmem [thread:$0]  (!%p1379_p11), %s1377_s13, 1024, %s1383_s16, %s1385_s28, %s1174_s23, %s1174_s23, %s1175_s27  }
  0x74   : > { %p1528_p9 = scmp.ne.s32.totalorder %s1522_s26, 0 }
  0x75   : > { %s1419_s29 = sand.u32 (!%p1528_p9), 1, %s1161_s19   ;;  %p1529_p0 = scmp.ne.s32.totalorder (!%p1528_p9), %s1520_s24, 0 }
  0x76   : > { %243 = sbr.rel (%p1528_p9) target bundleno = 622 (0x26e), region = 40  ;;  %s754_s8 = sshll.u32 (!%p1528_p9), %s1419_s29, 6 }
  0x77   : > { %s246_s11 = scalar_lea.sflag (!%p1528_p9), [#allocation3], %s1419_s29  ;;  %s1425_s6 = scalar_lea.vmem (!%p1528_p9), [#allocation2], %s754_s8 }
  0x7d   : > { %1140 = dma.done.wait (%p1529_p0), %s246_s11, 1024  }
  0x7e   : > { %1142 = vsyncadd (%p1529_p0), %s246_s11, 4294966272  ;;  %p1530_p11 = scmp.eq.s32.totalorder %s1235_s22, 0 }
  0x80   : > { %1144 = dma.done.wait (%p1530_p11), [#allocation6], 896   ;;  %p1531_p8 = pmov %p1530_p11 }
  0x82   : > { %1146 = vsyncadd (%p1531_p8), [#allocation6], 4294966400  ;;  %p1532_p13 = pmov %p1531_p8 }
  0x83   : > { %p1533_p6 = pmov %p1531_p8 }
  0x84   : > { %1148 = dma.done.wait (%p1532_p13), [#allocation9], 2048  }
  0x85   : > { %1150 = vsyncadd (%p1533_p6), [#allocation9], 4294965248  ;;  %v1177_v0 = vmov 0.0|0.0   ;;  %vm1178_vm0 = vmmov 0   ;;  %v1179_v1 = vmov 0.0   ;;  %vm298_vm1 = vcmask 326656  }
  0x86   : > { %858 = vmatprep.subr.bf16.mxu0 %v1177_v0  ;;  %811 = vmatprep.mubr.msk.f32.mxu0 %vm1178_vm0, %v1179_v1  ;;  %v340_v2 = vld [vmem:[#allocation7] sm:$0xff]  ;;  %v341_v3 = vld [vmem:[#allocation7 + $0x8] sm:$0xff]  ;;  %v342_v4 = vld [vmem:[#allocation7 + $0x10] sm:$0xff]  ;;  %vm349_vm2 = vcmask 1041409   ;;  %vm351_vm3 = vcmask 1042434   ;;  %vm353_vm4 = vcmask 1043459  }
  0x87   : > { %v859_v5 = vpack.c.bf16 %v341_v3, %v340_v2  ;;  %v343_v6 = vld [vmem:[#allocation7 + $0x18] sm:$0xff]  ;;  %v290_v7 = vld [vmem:[%s1425_s6] sm:$0xff]  ;;  %v292_v9 = vld [vmem:[%s1425_s6 + $0x10] sm:$0xff]  ;;  %s287_s23 = scalar_lea.vmem [#allocation10], %s754_s8  ;;  %s770_s13 = sshll.u32 %s1235_s22, 10 }
  0x88   : > { %v291_v8 = vld [vmem:[%s1425_s6 + $0x8] sm:$0xff]  ;;  %v293_v10 = vld [vmem:[%s1425_s6 + $0x18] sm:$0xff]  ;;  %v299_v11 = vsel %vm298_vm1, %v290_v7, 0.0  ;;  %v862_v12 = vpack.c.bf16 %v343_v6, %v342_v4  ;;  %v294_v13 = vld [vmem:[%s1425_s6 + $0x20] sm:$0xff]  ;;  %v308_v17 = vsel %vm298_vm1, %v292_v9, 0.0  ;;  %s641_s27 = sshll.u32 %s287_s23, 4  ;;  %s1467_s12 = scalar_lea.hbm %s1516_s5, %s770_s13  ;;  %s1462_s27 = int_to_ptr.vmem [resolvable:$true] %s641_s27 }
  0x89   : > { %860 = vmatpush3.bf16.msra.mxu0 %v859_v5  ;;  %v295_v14 = vld [vmem:[%s1425_s6 + $0x28] sm:$0xff]  ;;  %v296_v15 = vld [vmem:[%s1425_s6 + $0x30] sm:$0xff]  ;;  %v300_v16 = vsel %vm298_vm1, %v291_v8, 0.0  ;;  %v309_v18 = vsel %vm298_vm1, %v293_v10, 0.0  ;;  %v297_v19 = vld [vmem:[%s1425_s6 + $0x38] sm:$0xff]  ;;  %v317_v22 = vsel %vm298_vm1, %v294_v13, 0.0 }
  0x8a   : > { %861 = vmatprep.subr.bf16.mxu0 %v1177_v0  ;;  %v301_v20 = vadd.f32 %v300_v16, %v299_v11  ;;  %v310_v21 = vadd.f32 %v309_v18, %v308_v17  ;;  %v318_v23 = vsel %vm298_vm1, %v295_v14, 0.0  ;;  %v490_v24 = vld [vmem:[#allocation8] sm:$0xff]  ;;  %v491_v25 = vld [vmem:[#allocation8 + $0x8] sm:$0xff]  ;;  %v326_v27 = vsel %vm298_vm1, %v296_v15, 0.0  ;;  %v492_v30 = vld [vmem:[#allocation8 + $0x10] sm:$0xff]  ;;  %s627_s9 = scalar_lea.sflag [#allocation4], %s1419_s29 }
  0x8b   : > { %v319_v26 = vadd.f32 %v318_v23, %v317_v22  ;;  %v327_v28 = vsel %vm298_vm1, %v297_v19, 0.0  ;;  %v864_v29 = vpack.c.bf16 %v491_v25, %v490_v24  ;;  %v493_v31 = vld [vmem:[#allocation8 + $0x18] sm:$0xff]  ;;  %v494_v36 = vld [vmem:[#allocation8 + $0x20] sm:$0xff]  ;;  %v495_v37 = vld [vmem:[#allocation8 + $0x28] sm:$0xff]  ;;  %v433_v22 = vlaneseq  ;;  %s1095_s22 = scalar_lea.vmem %s1462_s27, 1024  ;;  %s1181_s15 = smov [#allocation10]  }
  0x8c   : > { %v302_v32 = vrot.slane %v301_v20, 4  ;;  %v311_v33 = vrot.slane %v310_v21, 4  ;;  %v328_v34 = vadd.f32 %v327_v28, %v326_v27  ;;  %v868_v35 = vpack.c.bf16 %v493_v31, %v492_v30  ;;  %v344_v39 = vld [vmem:[#allocation7 + $0x20] sm:$0xff]  ;;  %v496_v48 = vld [vmem:[#allocation8 + $0x30] sm:$0xff]  ;;  %v498_v59 = vld [vmem:[#allocation8 + $0x40] sm:$0xff]  ;;  %p1096_p10 = scmp.ne.s32.totalorder %s1462_s27, %s1095_s22  ;;  %s1099_s17 = sshll.u32 %s1181_s15, 4  ;;  %s1100_s17 = int_to_ptr.vmem [resolvable:$false] %s1099_s17 }
  0x8d   : > { %863 = vmatpush3.bf16.msra.mxu0 %v862_v12  ;;  %v320_v38 = vrot.slane %v319_v26, 4  ;;  %865 = vmatprep.subr.bf16.mxu1 %v864_v29  ;;  %v872_v44 = vpack.c.bf16 %v495_v37, %v494_v36  ;;  %v497_v49 = vld [vmem:[#allocation8 + $0x38] sm:$0xff]  ;;  %v499_v60 = vld [vmem:[#allocation8 + $0x48] sm:$0xff]  ;;  %v500_v11 = vld [vmem:[#allocation8 + $0x50] sm:$0xff]  ;;  %v434_v24 = vshrl.u32 %v433_v22, 7  ;;  %s1101_s10 = scalar_lea.vmem %s1100_s17, 2048  ;;  %p1102_p12 = scmp.lt.s32.totalorder %s1462_s27, %s1100_s17 }
  0x8e   : > { %809 = vmatprep.subr.mxu0 %v1179_v1  ;;  %v303_v40 = vadd.f32 %v302_v32, %v301_v20  ;;  %v312_v41 = vadd.f32 %v311_v33, %v310_v21  ;;  %v329_v42 = vrot.slane %v328_v34, 4  ;;  %867 = vmatpush3.bf16.msra.mxu1 %v864_v29  ;;  %v876_v55 = vpack.c.bf16 %v497_v49, %v496_v48  ;;  %v501_v12 = vld [vmem:[#allocation8 + $0x58] sm:$0xff]  ;;  %v502_v14 = vld [vmem:[#allocation8 + $0x60] sm:$0xff]  ;;  %v503_v15 = vld [vmem:[#allocation8 + $0x68] sm:$0xff]  ;;  %p1097_p3 = pnand %p1096_p10, %p1368_p5  ;;  %p1103_p1 = scmp.lt.s32.totalorder %s1101_s10, %s1095_s22 }
  0x8f   : > { %v321_v43 = vadd.f32 %v320_v38, %v319_v26  ;;  %869 = vmatprep.subr.bf16.mxu1 %v868_v35  ;;  %v880_v2 = vpack.c.bf16 %v499_v60, %v498_v59  ;;  %v884_v13 = vpack.c.bf16 %v501_v12, %v500_v11  ;;  %v888_v16 = vpack.c.bf16 %v503_v15, %v502_v14  ;;  %v504_v17 = vld [vmem:[#allocation8 + $0x70] sm:$0xff]  ;;  %v505_v18 = vld [vmem:[#allocation8 + $0x78] sm:$0xff]  ;;  %v427_v32 = vld [vmem:[#allocation5] sm:$0xff] }
  0x90   : > { %v304_v45 = vrot.slane %v303_v40, 2  ;;  %v313_v46 = vrot.slane %v312_v41, 2  ;;  %v330_v47 = vadd.f32 %v329_v42, %v328_v34  ;;  %v892_v19 = vpack.c.bf16 %v505_v18, %v504_v17  ;;  %v428_v33 = vld [vmem:[#allocation5 + $0x8] sm:$0xff]  ;;  %p1098_p7 = pneg %p1097_p3  ;;  %p1104_p2 = por %p1103_p1, %p1102_p12 }
  0x91   : > { %810 = vmatpush3.msra.mxu0 %v344_v39  ;;  %v322_v50 = vrot.slane %v321_v43, 2  ;;  %v1180_v20 = vmov 1966171168   ;;  %v456_v28 = vsub.s32 0, %v434_v24 }
  0x92   : > { %v305_v51 = vadd.f32 %v304_v45, %v303_v40  ;;  %v314_v52 = vadd.f32 %v313_v46, %v312_v41  ;;  %v331_v53 = vrot.slane %v330_v47, 2  ;;  %871 = vmatpush3.bf16.msra.mxu1 %v868_v35  ;;  %v431_v21 = vunpack.c.l.s4 %v1180_v20  ;;  %p1105_p4 = pnand %p1104_p2, %p1098_p7 }
  0x93   : > { %v323_v54 = vadd.f32 %v322_v50, %v321_v43  ;;  %873 = vmatprep.subr.bf16.mxu1 %v872_v44 }
  0x94   : > { %v306_v56 = vrot.slane %v305_v51, 1  ;;  %v315_v57 = vrot.slane %v314_v52, 1  ;;  %v332_v58 = vadd.f32 %v331_v53, %v330_v47  ;;  %v432_v23 = vunpack.c.0.s8 %v431_v21 }
  0x95   : > { %v324_v61 = vrot.slane %v323_v54, 1 }
  0x96   : > { %v307_v62 = vadd.f32 %v306_v56, %v305_v51  ;;  %v316_v63 = vadd.f32 %v315_v57, %v314_v52  ;;  %v333_v0 = vrot.slane %v332_v58, 1  ;;  %875 = vmatpush3.bf16.msra.mxu1 %v872_v44  ;;  %v435_v25 = vsub.s32 %v432_v23, %v434_v24  ;;  %v760_v57 = vld [vmem:[%s1515_s4] ss:$0 sm:$0xff] }
  0x97   : > { %v325_v1 = vadd.f32 %v324_v61, %v323_v54  ;;  %877 = vmatprep.subr.bf16.mxu1 %v876_v55 }
  0x98   : > { %v334_v3 = vadd.f32 %v333_v0, %v332_v58  ;;  %v336_v4 = vmul.f32 0.0625, %v307_v62  ;;  %v337_v5 = vmul.f32 0.0625, %v316_v63 }
  0x99   : > { %v338_v6 = vmul.f32 0.0625, %v325_v1 }
  0x9a   : > { %v339_v7 = vmul.f32 0.0625, %v334_v3  ;;  %v350_v8 = vsel %vm349_vm2, %v337_v5, %v336_v4  ;;  %879 = vmatpush3.bf16.msra.mxu1 %v876_v55 }
  0x9b   : > { %v352_v9 = vsel %vm351_vm3, %v338_v6, %v350_v8  ;;  %881 = vmatprep.subr.bf16.mxu1 %v880_v2 }
  0x9c   : > { %v354_v10 = vsel %vm353_vm4, %v339_v7, %v352_v9 }
  0x9d   : > { %812 = vmatmul.mubr.msk.f32.vlgmr.msra.gmra.mrb[0].mxu0 %vm298_vm1, %v354_v10 }
  0x9e   : > { %883 = vmatpush3.bf16.msra.mxu1 %v880_v2 }
  0x9f   : > { %885 = vmatprep.subr.bf16.mxu1 %v884_v13 }
  0xa2   : > { %887 = vmatpush3.bf16.msra.mxu1 %v884_v13 }
  0xa3   : > { %889 = vmatprep.subr.bf16.mxu1 %v888_v16 }
  0xa6   : > { %891 = vmatpush3.bf16.msra.mxu1 %v888_v16 }
  0xa7   : > { %893 = vmatprep.subr.bf16.mxu1 %v892_v19 }
  0xaa   : > { %895 = vmatpush3.bf16.msra.mxu1 %v892_v19 }
 0x170   : > { %v423_v26 = vpop.f32.mrb[0].mxu0 }
 0x171   : > { %v436_v27 = vrot.slane %v423_v26, %v435_v25  ;;  %v813_v29 = vpop.f32.mrb[1].mxu0 }
 0x173   : > { %v437_v30 = vcombine.high %v436_v27, %v436_v27  ;;  %v444_v31 = vrot.slane %v436_v27, %v435_v25 }
 0x175   : > { %v451_v34 = vrot.slane %v437_v30, %v435_v25  ;;  %v452_v35 = vcombine.high %v444_v31, %v444_v31  ;;  %v457_v36 = vrot.slane %v444_v31, %v456_v28 }
 0x177   : > { %v453_v37 = vcombine.high %v451_v34, %v451_v34  ;;  %v474_v38 = vadd.f32 %v457_v36, %v427_v32  ;;  %v475_v39 = vadd.f32 %v457_v36, %v428_v33  ;;  %v461_v40 = vrot.slane %v451_v34, %v456_v28 }
 0x178   : > { %v465_v41 = vrot.slane %v452_v35, %v456_v28 }
 0x179   : > { %v482_v42 = vmax.f32 %v474_v38, 0.0  ;;  %v483_v43 = vmax.f32 %v475_v39, 0.0  ;;  %v476_v44 = vadd.f32 %v461_v40, %v427_v32  ;;  %v477_v45 = vadd.f32 %v461_v40, %v428_v33 }
 0x17a   : > { %v478_v47 = vadd.f32 %v465_v41, %v427_v32  ;;  %v469_v48 = vrot.slane %v453_v37, %v456_v28  ;;  %v479_v50 = vadd.f32 %v465_v41, %v428_v33 }
 0x17b   : > { %846 = vmatprep.mubr.f32.mxu1 %v482_v42  ;;  %v484_v46 = vmax.f32 %v476_v44, 0.0  ;;  %v485_v49 = vmax.f32 %v477_v45, 0.0 }
 0x17c   : > { %847 = vmatmul.mubr.f32.vlgmr.msra.gmra.mrb[0].mxu1 %v483_v43  ;;  %v486_v51 = vmax.f32 %v478_v47, 0.0  ;;  %v480_v52 = vadd.f32 %v469_v48, %v427_v32  ;;  %v487_v53 = vmax.f32 %v479_v50, 0.0  ;;  %v481_v54 = vadd.f32 %v469_v48, %v428_v33 }
 0x17d   : > { %849 = vmatprep.mubr.f32.mxu1 %v484_v46 }
 0x17e   : > { %v488_v55 = vmax.f32 %v480_v52, 0.0  ;;  %v489_v56 = vmax.f32 %v481_v54, 0.0 }
 0x180   : > { %850 = vmatmul.mubr.f32.gmra.mrb[2].mxu1 %v485_v49 }
 0x181   : > { %852 = vmatprep.mubr.f32.mxu1 %v486_v51 }
 0x184   : > { %853 = vmatmul.mubr.f32.gmra.mrb[4].mxu1 %v487_v53 }
 0x185   : > { %855 = vmatprep.mubr.f32.mxu1 %v488_v55 }
 0x188   : > { %856 = vmatmul.mubr.f32.gmra.mrb[6].mxu1 %v489_v56 }
 0x24f   : > { %v848_v58 = vpop.f32.mrb[0].mxu1 }
 0x250   : > { %v585_v59 = vadd.f32 %v848_v58, %v760_v57  ;;  %v579_v60 = vpop.f32.mrb[1].mxu1 }
 0x251   : > { %v580_v61 = vadd.f32 %v760_v57, %v579_v60 }
 0x252   : > { %619 = vst [vmem:[%s287_s23 + $0x8] sm:$0xff] %v585_v59 }
 0x253   : > { %618 = vst [vmem:[%s287_s23] sm:$0xff] %v580_v61  ;;  %v851_v62 = vpop.f32.mrb[2].mxu1 }
 0x254   : > { %v595_v63 = vadd.f32 %v851_v62, %v760_v57  ;;  %v589_v0 = vpop.f32.mrb[3].mxu1 }
 0x255   : > { %v590_v1 = vadd.f32 %v760_v57, %v589_v0 }
 0x256   : > { %621 = vst [vmem:[%s287_s23 + $0x18] sm:$0xff] %v595_v63 }
 0x257   : > { %620 = vst [vmem:[%s287_s23 + $0x10] sm:$0xff] %v590_v1  ;;  %v854_v2 = vpop.f32.mrb[4].mxu1 }
 0x258   : > { %v605_v3 = vadd.f32 %v854_v2, %v760_v57  ;;  %v599_v4 = vpop.f32.mrb[5].mxu1 }
 0x259   : > { %v600_v5 = vadd.f32 %v760_v57, %v599_v4 }
 0x25a   : > { %623 = vst [vmem:[%s287_s23 + $0x28] sm:$0xff] %v605_v3 }
 0x25b   : > { %622 = vst [vmem:[%s287_s23 + $0x20] sm:$0xff] %v600_v5  ;;  %v857_v6 = vpop.f32.mrb[6].mxu1 }
 0x25c   : > { %v615_v7 = vadd.f32 %v857_v6, %v760_v57  ;;  %v609_v8 = vpop.f32.mrb[7].mxu1 }
 0x25d   : > { %v610_v9 = vadd.f32 %v760_v57, %v609_v8 }
 0x25e   : > { %625 = vst [vmem:[%s287_s23 + $0x38] sm:$0xff] %v615_v7 }
 0x25f   : > { %624 = vst [vmem:[%s287_s23 + $0x30] sm:$0xff] %v610_v9 }
 0x260   : > { %1108 = shalt.err (!%p1105_p4)
}
 0x261   : > { %s1109_s8 = scalar_lea.hbm %s1467_s12, 1024  ;;  %s1113_s24 = scalar_lea.hbm %s1516_s5, 2048 }
 0x262   : > { %p1110_p9 = scmp.ne.s32.totalorder %s1467_s12, %s1109_s8  ;;  %p1114_p8 = scmp.lt.u32.totalorder %s1467_s12, %s1516_s5 }
 0x263   : > { %p1115_p13 = scmp.lt.u32.totalorder %s1113_s24, %s1109_s8  ;;  %p1117_p10 = scmp.lt.u32.totalorder %s1109_s8, %s1467_s12 }
 0x264   : > { %p1111_p0 = pnand %p1110_p9, %p1368_p5 }
 0x265   : > { %p1116_p6 = por %p1115_p13, %p1114_p8 }
 0x266   : > { %p1112_p11 = pneg %p1111_p0 }
 0x267   : > { %p1118_p3 = por %p1117_p10, %p1116_p6 }
 0x269   : > { %p1119_p7 = pnand %p1118_p3, %p1112_p11 }
 0x26b   : > { %1122 = shalt.err (!%p1119_p7)
}
 0x26c   : > { %s1182_s13 = smov 128   ;;  %s1183_s16 = smov 8  }
 0x26d   : > { %910 = dma.vmem_to_hbm [thread:$0]  (%p1368_p5), %s1462_s27, 1024, %s1467_s12, %s627_s9, %s1182_s13, %s1182_s13, %s1183_s16  }
 0x26e PF: > { %s656_s28 = sand.u32 1, %s1157_s18   ;;  %p1534_p12 = scmp.ne.s32.totalorder %s1521_s25, 0 }
 0x26f   : > { %p1535_p1 = scmp.ge.s32.totalorder %s1169_s21, 2  ;;  %s657_s22 = scalar_lea.sflag [#allocation4], %s656_s28 }
 0x271   : > { %p927_p2 = pnand %p1535_p1, %p1534_p12 }
 0x273   : > { %1152 = dma.done.wait (!%p927_p2), %s657_s22, 1024  }
 0x274   : > { %1154 = vsyncadd (!%p927_p2), %s657_s22, 4294966272  ;;  %p20_p4 = scmp.ge.s32.totalorder %s1354_s14, 4   ;;  %s1536_s18 = smov %s1161_s19 }
 0x275   : > { %s1537_s19 = smov %s1165_s20  ;;  %s1538_s20 = smov %s1364_s30 }
 0x276   : > { %s1539_s21 = smov %s1354_s14  ;;  %22 = sbr.rel (!%p20_p4) target bundleno = 7 (0x7), region = 97 }
 0x27d   :  { %662 = vsyncpa [#allocation3], 1 }
 0x27e   :  { %664 = vsyncpa [#allocation3 + $0x1], 1 }
 0x27f   :  { %665 = vsyncpa [#allocation6], 1 }
 0x280   :  { %666 = vsyncpa [#allocation9], 1 }
 0x281   :  { %667 = vsyncpa [#allocation4], 1 }
 0x282   :  { %669 = vsyncpa [#allocation4 + $0x1], 1 }

</bundles_post_ra>
